<compile_context>
chip_gen: v7x
topology: tpu7x:2x2x1
jax: 0.10.0
libtpu: 0.0.40
codegen_flags: <defaults>
</compile_context>

<pallas_src>
import math
import numpy as np
import jax
import jax.numpy as jnp
from jax import lax
from jax.experimental import pallas as pl
from jax.experimental.pallas import tpu as pltpu

KSIZE = 31
PAD = 15


# ---------------------------------------------------------------------------
# Parameter construction (deterministic, mirrors gkern(31, 4) from the module)
# ---------------------------------------------------------------------------
def _norm_cdf(x):
    return np.array(
        [0.5 * (1.0 + math.erf(float(v) / math.sqrt(2.0))) for v in x],
        dtype=np.float64,
    )


def gkern1d(kernlen=16, nsig=3):
    interval = (2 * nsig + 1.0) / kernlen
    x = np.linspace(-nsig - interval / 2.0, nsig + interval / 2.0, kernlen + 1)
    return np.diff(_norm_cdf(x))          # >= 0, symmetric


def gkern(kernlen=16, nsig=3):
    kern1d = gkern1d(kernlen, nsig)
    kernel_raw = np.sqrt(np.outer(kern1d, kern1d))
    return kernel_raw / kernel_raw.sum()


def separable_factor(kern1d):
    """v such that gkern == outer(v, v): v = sqrt(kern1d)/sum(sqrt(kern1d))."""
    u = np.sqrt(np.asarray(kern1d, np.float64))
    return u / u.sum()


def band(v, n):
    """Toeplitz band B (n x n): B[a, b] = v[b - a + PAD] if |b - a| <= PAD else 0.

    Out-of-band zeros implement the zero "same" padding of the conv implicitly,
    so the kernel never needs a padded input tensor.
    """
    a = np.arange(n)[:, None]
    b = np.arange(n)[None, :]
    d = b - a + PAD
    valid = (d >= 0) & (d < KSIZE)
    return np.where(valid, v[np.clip(d, 0, KSIZE - 1)], 0.0).astype(np.float32)


# ---------------------------------------------------------------------------
# Block-size / VMEM heuristics (generation aware)
# ---------------------------------------------------------------------------
def _is_v7x():
    try:
        kind = jax.devices()[0].device_kind.lower()
    except Exception:
        return False
    return ("v7" in kind) or ("7x" in kind)


def _vmem_estimate(nb, h, w, isz):
    blk = nb * h * w
    return (2 * blk * isz                 # attention block (double-buffered)
            + 2 * blk * 4                 # f32 output block (double-buffered)
            + blk * 4                     # t scratch (column-mixed intermediate)
            + 2 * (h * h + w * w) * isz   # R and C operands (conservative x2)
            + 4 * blk * 4)                # headroom for in-kernel temporaries


def _choose_block(n, h, w, isz, *, keep_two_steps, vmem_budget=40 << 20):
    """Samples per grid step.

    Target >= 256 rows on the matmul M dim, capped by the VMEM budget.  Keep
    >= 2 grid steps only on v7x (2 TensorCores can shard "parallel" steps); on
    single-TC v5e/v6e extra steps just add ~0.35us/step pipeline overhead.
    """
    nb = max(1, min(n, -(-256 // h)))
    while n % nb:
        nb -= 1
    while nb > 1 and _vmem_estimate(nb, h, w, isz) > vmem_budget:
        nb -= 1
        while n % nb:
            nb -= 1
    if keep_two_steps and n >= 2 and nb > n // 2:
        nb = max(1, n // 2)
        while n % nb:
            nb -= 1
    return nb


def _pick_tile(dim, tile=128, min_dim=512):
    """Output/K tile for the banded matmuls.  Only pays off once whole 128-wide
    K tiles can fall outside the +/-15 band (dim >= 512); smaller dims stay dense."""
    if dim >= min_dim and dim % tile == 0:
        return tile
    return None


# ---------------------------------------------------------------------------
# Pallas kernel: separable 31x31 "same" conv (R @ att @ C) + spatial min-max norm
# ---------------------------------------------------------------------------
def soft_kernel(att_ref, c_ref, r_ref, out_ref, t_ref):
    # att_ref: (nb, H, W)   attention block (matmul dtype)
    # c_ref:   (W, W)       column-mixing band (implicit zero padding)
    # r_ref:   (H, H)       row-mixing band
    # out_ref: (nb, H, W)   per-sample min-max normalized soft attention (f32)
    # t_ref:   (nb*H, W)    f32 VMEM scratch: column-mixed intermediate
    nb, h, w = att_ref.shape
    a2 = att_ref[...].reshape(nb * h, w)            # samples stacked on the M dim

    kt_w = _pick_tile(w)
    kt_h = _pick_tile(h)

    # ---- column mix: t = att @ C, skipping K tiles outside the +/-15 band ----
    if kt_w is None:
        t_ref[...] = jnp.dot(a2, c_ref[...], preferred_element_type=jnp.float32)
    else:
        # Static tiling loop: each iteration is one large (nb*H, 128, 128)
        # matmul accumulated and stored, so live values stay bounded.
        nt = w // kt_w
        for jt in range(nt):
            j0 = jt * kt_w
            k_lo = max(0, (j0 - PAD) // kt_w)
            k_hi = min(nt - 1, (j0 + kt_w - 1 + PAD) // kt_w)
            acc = None
            for kt in range(k_lo, k_hi + 1):
                k0 = kt * kt_w
                p = jnp.dot(a2[:, k0:k0 + kt_w],
                            c_ref[k0:k0 + kt_w, j0:j0 + kt_w],
                            preferred_element_type=jnp.float32)
                acc = p if acc is None else acc + p
            t_ref[:, j0:j0 + kt_w] = acc

    # ---- row mix: y = R @ t (batched over samples), written into out_ref ----
    if nb == 1:
        tmat = t_ref[...].astype(r_ref.dtype)               # (H, W)
        if kt_h is None:
            y = jnp.dot(r_ref[...], tmat, preferred_element_type=jnp.float32)
            out_ref[...] = y.reshape(1, h, w)
        else:
            nt = h // kt_h
            for it in range(nt):
                i0 = it * kt_h
                k_lo = max(0, (i0 - PAD) // kt_h)
                k_hi = min(nt - 1, (i0 + kt_h - 1 + PAD) // kt_h)
                acc = None
                for kt in range(k_lo, k_hi + 1):
                    k0 = kt * kt_h
                    p = jnp.dot(r_ref[i0:i0 + kt_h, k0:k0 + kt_h],
                                tmat[k0:k0 + kt_h, :],
                                preferred_element_type=jnp.float32)
                    acc = p if acc is None else acc + p
                out_ref[:, i0:i0 + kt_h, :] = acc.reshape(1, kt_h, w)
    else:
        # Small spatial sizes (nb > 1 only happens when H is small): one batched
        # contraction instead of nb serialized tiny matmuls + epilogues.
        t3 = t_ref[...].reshape(nb, h, w).astype(r_ref.dtype)
        rb = jnp.broadcast_to(r_ref[...], (nb, h, h))
        y = jnp.einsum('nij,njk->nik', rb, t3,
                       preferred_element_type=jnp.float32)
        out_ref[...] = y

    # ---- epilogue: per-sample min-max normalize, once for the whole block ----
    y = out_ref[...]                                          # (nb, H, W) f32
    mn = jnp.min(jnp.min(y, axis=2, keepdims=True), axis=1, keepdims=True)
    mx = jnp.max(jnp.max(y, axis=2, keepdims=True), axis=1, keepdims=True)
    inv = 1.0 / (mx - mn + 1e-8)          # exact scalar reciprocal per sample
    out_ref[...] = (y - mn) * inv


def soft_forward(attention, x, kern1d, *, matmul_dtype=jnp.float32):
    """attention: (N, 1, H, W) f32; x: (N, C, H, W) f32 (unused for the output,
    matching the reference where the x-multiply result is discarded).

    kern1d is the 1-D Gaussian factor from gkern1d(31, 4); the module's default
    (1,1,31,31) parameter is exactly outer(v, v) with v = separable_factor(kern1d).
    matmul_dtype=jnp.bfloat16 gives ~3x MXU throughput on v5e/v6e/v7x (relax the
    validation tolerance); jnp.float32 (default) matches the reference exactly.
    """
    del x  # dead code in the reference forward (local assignment, never returned)
    N, C, H, W = attention.shape
    assert C == 1, "gaussian kernel is (1,1,31,31): attention must have 1 channel"

    v = separable_factor(kern1d)
    # Correlation->convolution bookkeeping relies on band(v,.)^T; v from
    # gkern1d is symmetric so R and C are symmetric Toeplitz bands.
    assert np.allclose(v, v[::-1])
    r = jnp.asarray(band(v, H), matmul_dtype)        # (H, H): R[i,i'] = v[i'-i+PAD]
    c = jnp.asarray(band(v, W).T, matmul_dtype)      # (W, W): C[w',w] = v[w'-w+PAD]
    att = attention[:, 0].astype(matmul_dtype)       # (N, H, W), no spatial padding

    isz = jnp.dtype(matmul_dtype).itemsize
    nb = _choose_block(N, H, W, isz, keep_two_steps=_is_v7x())
    grid = (N // nb,)
    vmem_limit = int(min(60 << 20, max(_vmem_estimate(nb, H, W, isz) + (8 << 20),
                                       32 << 20)))

    out = pl.pallas_call(
        soft_kernel,
        out_shape=jax.ShapeDtypeStruct((N, H, W), jnp.float32),
        grid=grid,
        in_specs=[
            pl.BlockSpec((nb, H, W), lambda b: (b, 0, 0)),
            pl.BlockSpec((W, W), lambda b: (0, 0)),   # constant block: fetched once
            pl.BlockSpec((H, H), lambda b: (0, 0)),   # constant block: fetched once
        ],
        out_specs=pl.BlockSpec((nb, H, W), lambda b: (b, 0, 0)),
        scratch_shapes=[pltpu.VMEM((nb * H, W), jnp.float32)],
        compiler_params=pltpu.CompilerParams(
            dimension_semantics=("parallel",),
            vmem_limit_bytes=vmem_limit),
    )(att, c, r)

    return out[:, None, :, :]                         # (N, 1, H, W)


# ---------------------------------------------------------------------------
def _reference(attention, gk2d):
    """Pure-JAX reference (conv2d + min_max_norm), for validation."""
    kern = jnp.asarray(gk2d, jnp.float32)[None, None]              # (1,1,31,31)
    conv = lax.conv_general_dilated(
        attention, kern, window_strides=(1, 1),
        padding=((PAD, PAD), (PAD, PAD)),
        dimension_numbers=("NCHW", "OIHW", "NCHW"),
        precision=lax.Precision.HIGHEST)
    mx = conv.max(axis=(2, 3), keepdims=True)
    mn = conv.min(axis=(2, 3), keepdims=True)
    return (conv - mn) / (mx - mn + 1e-8)


if __name__ == "__main__":
    key = jax.random.PRNGKey(0)
    k1, k2 = jax.random.split(key)

    N, H, W = 2, 16, 16
    attention = jax.random.uniform(k1, (N, 1, H, W), dtype=jnp.float32)
    x = jax.random.normal(k2, (N, 4, H, W), dtype=jnp.float32)

    kern1d = gkern1d(31, 4)           # deterministic module parameter (1-D factor)
    gk2d = np.float32(gkern(31, 4))   # full 2-D kernel (reference only)

    # f32 matmul operands: exact vs. the conv2d + min_max_norm reference.
    soft = jax.block_until_ready(soft_forward(attention, x, kern1d))
    ref = _reference(attention, gk2d)
    np.testing.assert_allclose(np.asarray(soft), np.asarray(ref),
                               rtol=1e-4, atol=1e-5)

    # bf16 matmul operands (MXU-native on v5e/v6e/v7x), f32 accumulation.
    soft_bf16 = jax.block_until_ready(
        soft_forward(attention, x, kern1d, matmul_dtype=jnp.bfloat16))
    np.testing.assert_allclose(np.asarray(soft_bf16), np.asarray(ref),
                               rtol=3e-2, atol=3e-2)

    # Larger spatial size exercises the band-skipping (tiled-K) matmul path.
    att2 = jax.random.uniform(jax.random.PRNGKey(1), (1, 1, 512, 512),
                              dtype=jnp.float32)
    x2 = jnp.zeros((1, 1, 512, 512), jnp.float32)
    soft2 = jax.block_until_ready(soft_forward(att2, x2, kern1d))
    ref2 = _reference(att2, gk2d)
    np.testing.assert_allclose(np.asarray(soft2), np.asarray(ref2),
                               rtol=1e-4, atol=1e-5)

    print("KERNEL_OK")
</pallas_src>

<mosaic_0001>
module attributes {stable_mosaic.version = 11 : i64} {
  func.func @soft_kernel(%arg0: i32, %arg1: memref<2x16x16xf32, #tpu.memory_space<vmem>>, %arg2: memref<16x16xf32, #tpu.memory_space<vmem>>, %arg3: memref<16x16xf32, #tpu.memory_space<vmem>>, %arg4: memref<2x16x16xf32, #tpu.memory_space<vmem>>, %arg5: memref<32x16xf32, #tpu.memory_space<vmem>>) attributes {dimension_semantics = [#tpu.dimension_semantics<parallel>], iteration_bounds = array<i64: 1>, scalar_prefetch = 0 : i64, scratch_operands = 1 : i64, tpu.core_type = #tpu.core_type<tc>, window_params = [{transform_indices = @transform_0, window_bounds = array<i64: 2, 16, 16>}, {pipeline_mode = #tpu.pipeline_mode<synchronous>, transform_indices = @transform_1, window_bounds = array<i64: 16, 16>}, {pipeline_mode = #tpu.pipeline_mode<synchronous>, transform_indices = @transform_2, window_bounds = array<i64: 16, 16>}, {transform_indices = @transform_3, window_bounds = array<i64: 2, 16, 16>}]} {
    %c0 = arith.constant 0 : index
    %c0_0 = arith.constant 0 : index
    %c0_1 = arith.constant 0 : index
    %0 = vector.load %arg1[%c0, %c0_0, %c0_1] : memref<2x16x16xf32, #tpu.memory_space<vmem>>, vector<2x16x16xf32>
    %1 = vector.shape_cast %0 : vector<2x16x16xf32> to vector<32x16xf32>
    %c0_2 = arith.constant 0 : index
    %c0_3 = arith.constant 0 : index
    %2 = vector.load %arg2[%c0_2, %c0_3] : memref<16x16xf32, #tpu.memory_space<vmem>>, vector<16x16xf32>
    %cst = arith.constant dense<0.000000e+00> : vector<32x16xf32>
    %3 = tpu.matmul %1, %2, %cst {dimension_numbers = #tpu.dot_dimension_numbers<[1], [0], [0], [1], [0, 0, 1, 1], [], []>} : vector<32x16xf32>, vector<16x16xf32>, vector<32x16xf32> -> vector<32x16xf32>
    %c0_4 = arith.constant 0 : index
    %c0_5 = arith.constant 0 : index
    %4 = vector.load %arg5[%c0_4, %c0_5] : memref<32x16xf32, #tpu.memory_space<vmem>>, vector<32x16xf32>
    tpu.vector_store %arg5[%c0_4, %c0_5], %3 {strides = array<i32>} : memref<32x16xf32, #tpu.memory_space<vmem>>, vector<32x16xf32>,
    %c0_6 = arith.constant 0 : index
    %c0_7 = arith.constant 0 : index
    %5 = vector.load %arg5[%c0_6, %c0_7] : memref<32x16xf32, #tpu.memory_space<vmem>>, vector<32x16xf32>
    %6 = vector.shape_cast %5 : vector<32x16xf32> to vector<2x16x16xf32>
    %c0_8 = arith.constant 0 : index
    %c0_9 = arith.constant 0 : index
    %7 = vector.load %arg3[%c0_8, %c0_9] : memref<16x16xf32, #tpu.memory_space<vmem>>, vector<16x16xf32>
    %8 = vector.shape_cast %7 : vector<16x16xf32> to vector<1x16x16xf32>
    %9 = vector.broadcast %8 : vector<1x16x16xf32> to vector<2x16x16xf32>
    "tpu.trace_start"() <{level = 10 : i32, message = "nij,njk->nik"}> : () -> ()
    %cst_10 = arith.constant dense<0.000000e+00> : vector<2x16x16xf32>
    %10 = tpu.matmul %9, %6, %cst_10 {dimension_numbers = #tpu.dot_dimension_numbers<[2], [1], [1], [2], [0, 0, 0, 1, 1, 2], [0], [0]>} : vector<2x16x16xf32>, vector<2x16x16xf32>, vector<2x16x16xf32> -> vector<2x16x16xf32>
    "tpu.trace_stop"() : () -> ()
    %c0_11 = arith.constant 0 : index
    %c0_12 = arith.constant 0 : index
    %c0_13 = arith.constant 0 : index
    %11 = vector.load %arg4[%c0_11, %c0_12, %c0_13] : memref<2x16x16xf32, #tpu.memory_space<vmem>>, vector<2x16x16xf32>
    tpu.vector_store %arg4[%c0_11, %c0_12, %c0_13], %10 {strides = array<i32>} : memref<2x16x16xf32, #tpu.memory_space<vmem>>, vector<2x16x16xf32>,
    %c0_14 = arith.constant 0 : index
    %c0_15 = arith.constant 0 : index
    %c0_16 = arith.constant 0 : index
    %12 = vector.load %arg4[%c0_14, %c0_15, %c0_16] : memref<2x16x16xf32, #tpu.memory_space<vmem>>, vector<2x16x16xf32>
    %cst_17 = arith.constant dense<0x7F800000> : vector<2x16xf32>
    %13 = vector.multi_reduction <minimumf>, %12, %cst_17 [2] : vector<2x16x16xf32> to vector<2x16xf32>
    %14 = vector.shape_cast %13 : vector<2x16xf32> to vector<2x16x1xf32>
    %cst_18 = arith.constant dense<0x7F800000> : vector<2x1xf32>
    %15 = vector.multi_reduction <minimumf>, %14, %cst_18 [1] : vector<2x16x1xf32> to vector<2x1xf32>
    %16 = vector.shape_cast %15 : vector<2x1xf32> to vector<2x1x1xf32>
    %cst_19 = arith.constant dense<0xFF800000> : vector<2x16xf32>
    %17 = vector.multi_reduction <maximumf>, %12, %cst_19 [2] : vector<2x16x16xf32> to vector<2x16xf32>
    %18 = vector.shape_cast %17 : vector<2x16xf32> to vector<2x16x1xf32>
    %cst_20 = arith.constant dense<0xFF800000> : vector<2x1xf32>
    %19 = vector.multi_reduction <maximumf>, %18, %cst_20 [1] : vector<2x16x1xf32> to vector<2x1xf32>
    %20 = vector.shape_cast %19 : vector<2x1xf32> to vector<2x1x1xf32>
    %21 = arith.subf %20, %16 : vector<2x1x1xf32>
    %cst_21 = arith.constant 9.99999993E-9 : f32
    %22 = vector.broadcast %cst_21 : f32 to vector<2x1x1xf32>
    %23 = arith.addf %21, %22 : vector<2x1x1xf32>
    %cst_22 = arith.constant 1.000000e+00 : f32
    %24 = vector.broadcast %cst_22 : f32 to vector<2x1x1xf32>
    %25 = arith.divf %24, %23 : vector<2x1x1xf32>
    %26 = vector.broadcast %16 : vector<2x1x1xf32> to vector<2x16x16xf32>
    %27 = arith.subf %12, %26 : vector<2x16x16xf32>
    %28 = vector.broadcast %25 : vector<2x1x1xf32> to vector<2x16x16xf32>
    %29 = arith.mulf %27, %28 : vector<2x16x16xf32>
    %c0_23 = arith.constant 0 : index
    %c0_24 = arith.constant 0 : index
    %c0_25 = arith.constant 0 : index
    %30 = vector.load %arg4[%c0_23, %c0_24, %c0_25] : memref<2x16x16xf32, #tpu.memory_space<vmem>>, vector<2x16x16xf32>
    tpu.vector_store %arg4[%c0_23, %c0_24, %c0_25], %29 {strides = array<i32>} : memref<2x16x16xf32, #tpu.memory_space<vmem>>, vector<2x16x16xf32>,
    return
  }
  func.func @transform_0(%arg0: i32) -> (i32, i32, i32) {
    %c0_i32 = arith.constant 0 : i32
    %c0_i32_0 = arith.constant 0 : i32
    %c0_i32_1 = arith.constant 0 : i32
    return %arg0, %c0_i32, %c0_i32_0 : i32, i32, i32
  }
  func.func @transform_1(%arg0: i32) -> (i32, i32) {
    %c0_i32 = arith.constant 0 : i32
    %c0_i32_0 = arith.constant 0 : i32
    %c0_i32_1 = arith.constant 0 : i32
    return %c0_i32, %c0_i32_0 : i32, i32
  }
  func.func @transform_2(%arg0: i32) -> (i32, i32) {
    %c0_i32 = arith.constant 0 : i32
    %c0_i32_0 = arith.constant 0 : i32
    %c0_i32_1 = arith.constant 0 : i32
    return %c0_i32, %c0_i32_0 : i32, i32
  }
  func.func @transform_3(%arg0: i32) -> (i32, i32, i32) {
    %c0_i32 = arith.constant 0 : i32
    %c0_i32_0 = arith.constant 0 : i32
    %c0_i32_1 = arith.constant 0 : i32
    return %arg0, %c0_i32, %c0_i32_0 : i32, i32, i32
  }
}

</mosaic_0001>

<bundles_post_ra>
// kernel: tpu_custom_call.1
= control target key start
LH: loop header
LB: loop body
LE: loop exit
PB: predicated region body
PF: predicated region fallthrough
CT: control target
= control target key end

     0   :  { %8 = vsyncpa [#allocation4], 0  ;;  %s722_s0 = inlined_call_operand.hbm [shape: f32[2,16,16], index: 0, kind: input, shape index: {}]   ;;  %s723_s1 = inlined_call_operand.hbm [shape: f32[16,16], index: 1, kind: input, shape index: {}]   ;;  %s724_s2 = inlined_call_operand.hbm [shape: f32[16,16], index: 2, kind: input, shape index: {}]   ;;  %s725_s3 = inlined_call_operand.hbm [shape: f32[2,16,16], index: 3, kind: output, shape index: {}]  }
   0x1   :  { %9 = vsyncpa [#allocation7], 0 }
   0x2   :  { %10 = vsyncpa [#allocation5], 0  ;;  %s586_s12 = smov [#allocation6]   ;;  %s587_s14 = smov [#allocation3]  }
   0x3   :  { %s28_s13 = sshll.u32 %s586_s12, 4  ;;  %s16_s15 = sshll.u32 %s587_s14, 4  ;;  %s29_s13 = int_to_ptr.vmem [resolvable:$true] %s28_s13  ;;  %s612_s15 = int_to_ptr.vmem [resolvable:$true] %s16_s15 }
   0x4   :  { %s492_s18 = scalar_lea.hbm %s723_s1, 256 }
   0x5   :  { %p493_p0 = scmp.ne.s32.totalorder %s723_s1, %s492_s18  ;;  %p496_p1 = scmp.lt.u32.totalorder %s492_s18, %s723_s1 }
   0x7   :  { %p498_p2 = pnand %p496_p1, %p493_p0 }
   0x9   :  { %501 = shalt.err (!%p498_p2)
}
   0xa   :  { %s502_s23 = scalar_lea.vmem %s29_s13, 256  ;;  %p507_p4 = scmp.lt.s32.totalorder %s29_s13, %s29_s13 }
   0xb   :  { %p503_p3 = scmp.ne.s32.totalorder %s29_s13, %s502_s23  ;;  %p508_p5 = scmp.lt.s32.totalorder %s502_s23, %s502_s23 }
   0xd   :  { %p509_p6 = por %p508_p5, %p507_p4 }
   0xf   :  { %p510_p7 = pnand %p509_p6, %p503_p3 }
  0x11   :  { %513 = shalt.err (!%p510_p7)
}
  0x12   :  { %s588_s24 = smov 128   ;;  %s589_s25 = smov 8  }
  0x13   :  { %34 = dma.hbm_to_vmem [thread:$0]  %s723_s1, 256, %s29_s13, [#allocation7], %s588_s24, %s588_s24, %s589_s25  }
  0x14   :  { %s514_s30 = scalar_lea.hbm %s722_s0, 512 }
  0x15   :  { %p515_p8 = scmp.ne.s32.totalorder %s722_s0, %s514_s30  ;;  %p518_p9 = scmp.lt.u32.totalorder %s514_s30, %s722_s0 }
  0x17   :  { %p520_p10 = pnand %p518_p9, %p515_p8 }
  0x19   :  { %523 = shalt.err (!%p520_p10)
}
  0x1a   :  { %s524_s8 = scalar_lea.vmem %s612_s15, 512  ;;  %p529_p12 = scmp.lt.s32.totalorder %s612_s15, %s612_s15 }
  0x1b   :  { %p525_p11 = scmp.ne.s32.totalorder %s612_s15, %s524_s8  ;;  %p530_p13 = scmp.lt.s32.totalorder %s524_s8, %s524_s8 }
  0x1d   :  { %p531_p0 = por %p530_p13, %p529_p12 }
  0x1f   :  { %p532_p1 = pnand %p531_p0, %p525_p11 }
  0x21   :  { %535 = shalt.err (!%p532_p1)
}
  0x22   :  { %22 = dma.hbm_to_vmem [thread:$0]  %s722_s0, 512, %s612_s15, [#allocation4], %s588_s24, %s588_s24, %s589_s25  }
  0x23   :  { %s590_s10 = smov [#allocation8]   ;;  %s536_s14 = scalar_lea.hbm %s724_s2, 256 }
  0x24   :  { %s40_s11 = sshll.u32 %s590_s10, 4  ;;  %p537_p2 = scmp.ne.s32.totalorder %s724_s2, %s536_s14  ;;  %s41_s11 = int_to_ptr.vmem [resolvable:$true] %s40_s11 }
  0x25   :  { %p540_p3 = scmp.lt.u32.totalorder %s536_s14, %s724_s2 }
  0x27   :  { %p542_p4 = pnand %p540_p3, %p537_p2 }
  0x29   :  { %545 = shalt.err (!%p542_p4)
}
  0x2a   :  { %s546_s20 = scalar_lea.vmem %s41_s11, 256  ;;  %p551_p6 = scmp.lt.s32.totalorder %s41_s11, %s41_s11 }
  0x2b   :  { %p547_p5 = scmp.ne.s32.totalorder %s41_s11, %s546_s20  ;;  %p552_p7 = scmp.lt.s32.totalorder %s546_s20, %s546_s20 }
  0x2d   :  { %p553_p8 = por %p552_p7, %p551_p6 }
  0x2f   :  { %p554_p9 = pnand %p553_p8, %p547_p5 }
  0x31   :  { %557 = shalt.err (!%p554_p9)
}
  0x32   :  { %46 = dma.hbm_to_vmem [thread:$0]  %s724_s2, 256, %s41_s11, [#allocation7], %s588_s24, %s588_s24, %s589_s25  }
  0x33   :  { %580 = dma.done.wait [#allocation4], 512  }
  0x34   :  { %581 = vsyncadd [#allocation4], 4294966784 }
  0x35   :  { %582 = dma.done.wait [#allocation7], 512  }
  0x36   :  { %583 = vsyncadd [#allocation7], 4294966784  ;;  %vm62_vm0 = vcmask 130048   ;;  %v60_v0 = vld [vmem:[#allocation6] sm:$0xff]  ;;  %v61_v1 = vld [vmem:[#allocation6 + $0x8] sm:$0xff]  ;;  %s591_s2 = smov [#allocation9]  }
  0x37   :  { %v56_v2 = vld [vmem:[#allocation3] sm:$0xff]  ;;  %v470_v3 = vpack.c.bf16 %v61_v1, %v60_v0  ;;  %v57_v4 = vld [vmem:[#allocation3 + $0x8] sm:$0xff]  ;;  %v58_v5 = vld [vmem:[#allocation3 + $0x10] sm:$0xff]  ;;  %s411_s21 = sshll.u32 %s591_s2, 4  ;;  %s412_s21 = int_to_ptr.vmem [resolvable:$true] %s411_s21 }
  0x38   :  { %450 = vmatprep.mubr.msk.f32.mxu0 %vm62_vm0, %v56_v2  ;;  %v59_v6 = vld [vmem:[#allocation3 + $0x18] sm:$0xff]  ;;  %v168_v7 = vld [vmem:[#allocation8] sm:$0xff]  ;;  %s558_s22 = scalar_lea.vmem %s412_s21, 512  ;;  %p563_p11 = scmp.lt.s32.totalorder %s412_s21, %s412_s21 }
  0x39   :  { %471 = vmatprep.subr.bf16.mxu0 %v470_v3  ;;  %460 = vmatprep.mubr.msk.f32.mxu1 %vm62_vm0, %v168_v7  ;;  %v169_v16 = vld [vmem:[#allocation8 + $0x8] sm:$0xff]  ;;  %p559_p10 = scmp.ne.s32.totalorder %s412_s21, %s558_s22  ;;  %p564_p12 = scmp.lt.s32.totalorder %s558_s22, %s558_s22 }
  0x3a   :  { %473 = vmatpush3.bf16.msra.mxu0 %v470_v3 }
  0x3b   :  { %p565_p13 = por %p564_p12, %p563_p11 }
  0x3d   :  { %451 = vmatmul.mubr.msk.f32.vlgmr.msra.gmra.mrb[0].mxu0 %vm62_vm0, %v57_v4  ;;  %p566_p0 = pnand %p565_p13, %p559_p10 }
  0x3e   :  { %453 = vmatprep.mubr.msk.f32.mxu0 %vm62_vm0, %v58_v5 }
  0x41   :  { %454 = vmatmul.mubr.msk.f32.gmra.mrb[2].mxu0 %vm62_vm0, %v59_v6 }
 0x110   :  { %v452_v8 = vpop.f32.mrb[0].mxu0 }
 0x111   :  { %161 = vst.msk [vmem:[#allocation2 + $0x8] sm:$0xff] %vm62_vm0, %v452_v8  ;;  %v141_v9 = vpop.f32.mrb[1].mxu0 }
 0x112   :  { %160 = vst.msk [vmem:[#allocation2] sm:$0xff] %vm62_vm0, %v141_v9 }
 0x114   :  { %v455_v10 = vpop.f32.mrb[2].mxu0 }
 0x115   :  { %163 = vst.msk [vmem:[#allocation2 + $0x18] sm:$0xff] %vm62_vm0, %v455_v10  ;;  %v151_v11 = vpop.f32.mrb[3].mxu0 }
 0x116   :  { %162 = vst.msk [vmem:[#allocation2 + $0x10] sm:$0xff] %vm62_vm0, %v151_v11 }
 0x118   :  { %v165_v12 = vld [vmem:[#allocation2 + $0x8] sm:$0xff] }
 0x119   :  { %v164_v13 = vld [vmem:[#allocation2] sm:$0xff] }
 0x11a   :  { %v474_v14 = vpack.c.bf16 %v165_v12, %v164_v13 }
 0x11c   :  { %475 = vmatprep.subr.bf16.mxu1 %v474_v14  ;;  %v167_v15 = vld [vmem:[#allocation2 + $0x18] sm:$0xff] }
 0x11d   :  { %477 = vmatpush3.bf16.msra.mxu1 %v474_v14  ;;  %v166_v17 = vld [vmem:[#allocation2 + $0x10] sm:$0xff] }
 0x11e   :  { %v478_v18 = vpack.c.bf16 %v167_v15, %v166_v17 }
 0x120   :  { %461 = vmatmul.mubr.msk.f32.vlgmr.msra.gmra.mrb[0].mxu1 %vm62_vm0, %v169_v16  ;;  %479 = vmatprep.subr.bf16.mxu1 %v478_v18 }
 0x121   :  { %481 = vmatpush3.bf16.msra.mxu1 %v478_v18  ;;  %467 = vmatprep.mubr.msk.f32.mxu1 %vm62_vm0, %v168_v7 }
 0x124   :  { %468 = vmatmul.mubr.msk.f32.vlgmr.msra.gmra.mrb[2].mxu1 %vm62_vm0, %v169_v16 }
 0x1f3   :  { %v462_v19 = vpop.f32.mrb[0].mxu1 }
 0x1f4   :  { %327 = vst.msk [vmem:[#allocation9 + $0x8] sm:$0xff] %vm62_vm0, %v462_v19  ;;  %v242_v20 = vpop.f32.mrb[1].mxu1 }
 0x1f5   :  { %326 = vst.msk [vmem:[#allocation9] sm:$0xff] %vm62_vm0, %v242_v20 }
 0x1f7   :  { %v469_v21 = vpop.f32.mrb[2].mxu1 }
 0x1f8   :  { %329 = vst.msk [vmem:[#allocation9 + $0x18] sm:$0xff] %vm62_vm0, %v469_v21  ;;  %v317_v22 = vpop.f32.mrb[3].mxu1 }
 0x1f9   :  { %328 = vst.msk [vmem:[#allocation9 + $0x10] sm:$0xff] %vm62_vm0, %v317_v22 }
 0x1fb   :  { %v680_v23 = vld [vmem:[#allocation9 + $0x8] sm:$0xff] }
 0x1fc   :  { %v363_v24 = vsel %vm62_vm0, %v680_v23, -inf  ;;  %v337_v25 = vsel %vm62_vm0, %v680_v23, inf  ;;  %v330_v26 = vld [vmem:[#allocation9] sm:$0xff] }
 0x1fd   :  { %364 = vmax.xlane.f32.xlu1 %v363_v24  ;;  %338 = vmin.xlane.f32.xlu0 %v337_v25  ;;  %v334_v28 = vsel %vm62_vm0, %v330_v26, inf  ;;  %v360_v31 = vsel %vm62_vm0, %v330_v26, -inf }
 0x1ff   :  { %v686_v27 = vld [vmem:[#allocation9 + $0x18] sm:$0xff] }
 0x200   :  { %v343_v29 = vsel %vm62_vm0, %v686_v27, inf  ;;  %v691_v30 = vld [vmem:[#allocation9 + $0x10] sm:$0xff]  ;;  %v369_v34 = vsel %vm62_vm0, %v686_v27, -inf }
 0x201   :  { %335 = vmin.xlane.f32.xlu0 %v334_v28  ;;  %344 = vmin.xlane.f32.xlu1 %v343_v29  ;;  %v340_v32 = vsel %vm62_vm0, %v691_v30, inf  ;;  %v366_v33 = vsel %vm62_vm0, %v691_v30, -inf }
 0x205   :  { %361 = vmax.xlane.f32.xlu0 %v360_v31  ;;  %341 = vmin.xlane.f32.xlu1 %v340_v32 }
 0x209   :  { %367 = vmax.xlane.f32.xlu0 %v366_v33  ;;  %370 = vmax.xlane.f32.xlu1 %v369_v34 }
 0x28a   :  { %v365_v35 = vpop.xlane.xlu1 %364  ;;  %v339_v36 = vpop.xlane.xlu0 %338 }
 0x28e   :  { %v336_v37 = vpop.xlane.xlu0 %335  ;;  %v345_v38 = vpop.xlane.xlu1 %344 }
 0x28f   :  { %v346_v39 = vmin.f32 %v336_v37, %v339_v36 }
 0x291   :  { %v347_v40 = vrot.slane %v346_v39, 4 }
 0x292   :  { %v362_v41 = vpop.xlane.xlu0 %361  ;;  %v342_v42 = vpop.xlane.xlu1 %341 }
 0x293   :  { %v348_v43 = vmin.f32 %v346_v39, %v347_v40  ;;  %v372_v44 = vmax.f32 %v362_v41, %v365_v35  ;;  %v353_v45 = vmin.f32 %v342_v42, %v345_v38 }
 0x295   :  { %v349_v46 = vrot.slane %v348_v43, 2  ;;  %v373_v47 = vrot.slane %v372_v44, 4  ;;  %v354_v48 = vrot.slane %v353_v45, 4 }
 0x296   :  { %v368_v49 = vpop.xlane.xlu0 %367  ;;  %v371_v50 = vpop.xlane.xlu1 %370 }
 0x297   :  { %v350_v51 = vmin.f32 %v348_v43, %v349_v46  ;;  %v374_v52 = vmax.f32 %v372_v44, %v373_v47  ;;  %v355_v53 = vmin.f32 %v353_v45, %v354_v48  ;;  %v379_v54 = vmax.f32 %v368_v49, %v371_v50 }
 0x299   :  { %v375_v55 = vrot.slane %v374_v52, 2  ;;  %v356_v56 = vrot.slane %v355_v53, 2  ;;  %v380_v57 = vrot.slane %v379_v54, 4  ;;  %v351_v58 = vrot.slane %v350_v51, 1 }
 0x29b   :  { %v376_v59 = vmax.f32 %v374_v52, %v375_v55  ;;  %v381_v60 = vmax.f32 %v379_v54, %v380_v57  ;;  %v357_v61 = vmin.f32 %v355_v53, %v356_v56  ;;  %v352_v0 = vmin.f32 %v350_v51, %v351_v58 }
 0x29d   :  { %v377_v62 = vrot.slane %v376_v59, 1  ;;  %v382_v63 = vrot.slane %v381_v60, 2  ;;  %v358_v2 = vrot.slane %v357_v61, 1  ;;  %v394_v11 = vsub.f32 %v330_v26, %v352_v0 }
 0x29e   :  { %v395_v12 = vsub.f32 %v680_v23, %v352_v0 }
 0x29f   :  { %v378_v1 = vmax.f32 %v376_v59, %v377_v62  ;;  %v383_v3 = vmax.f32 %v381_v60, %v382_v63  ;;  %v359_v7 = vmin.f32 %v357_v61, %v358_v2 }
 0x2a1   :  { %v386_v4 = vsub.f32 %v378_v1, %v352_v0  ;;  %v384_v5 = vrot.slane %v383_v3, 1  ;;  %v396_v16 = vsub.f32 %v691_v30, %v359_v7  ;;  %v397_v17 = vsub.f32 %v686_v27, %v359_v7 }
 0x2a3   :  { %v388_v6 = vadd.f32 1e-08, %v386_v4  ;;  %v385_v8 = vmax.f32 %v383_v3, %v384_v5 }
 0x2a5   :  { %488 = vrcp.f32 %v388_v6  ;;  %v387_v9 = vsub.f32 %v385_v8, %v359_v7 }
 0x2a7   :  { %v389_v10 = vadd.f32 1e-08, %v387_v9 }
 0x2a9   :  { %490 = vrcp.f32 %v389_v10 }
 0x2af   :  { %v489_v13 = vpop.eup %488 }
 0x2b0   :  { %v398_v14 = vmul.f32 %v489_v13, %v394_v11  ;;  %v399_v15 = vmul.f32 %v489_v13, %v395_v12 }
 0x2b2   :  { %402 = vst.msk [vmem:[#allocation9] sm:$0xff] %vm62_vm0, %v398_v14  ;;  %403 = vst.msk [vmem:[#allocation9 + $0x8] sm:$0xff] %vm62_vm0, %v399_v15 }
 0x2b3   :  { %v491_v18 = vpop.eup %490 }
 0x2b4   :  { %v400_v19 = vmul.f32 %v491_v18, %v396_v16  ;;  %v401_v20 = vmul.f32 %v491_v18, %v397_v17 }
 0x2b6   :  { %404 = vst.msk [vmem:[#allocation9 + $0x10] sm:$0xff] %vm62_vm0, %v400_v19  ;;  %405 = vst.msk [vmem:[#allocation9 + $0x18] sm:$0xff] %vm62_vm0, %v401_v20 }
 0x2b7   :  { %569 = shalt.err (!%p566_p0)
}
 0x2b8   :  { %s570_s27 = scalar_lea.hbm %s725_s3, 512 }
 0x2b9   :  { %p571_p1 = scmp.ne.s32.totalorder %s725_s3, %s570_s27  ;;  %p574_p2 = scmp.lt.u32.totalorder %s570_s27, %s725_s3 }
 0x2bb   :  { %p576_p3 = pnand %p574_p2, %p571_p1 }
 0x2bd   :  { %579 = shalt.err (!%p576_p3)
}
 0x2be   :  { %417 = dma.vmem_to_hbm [thread:$0]  %s412_s21, 512, %s725_s3, [#allocation5], %s588_s24, %s588_s24, %s589_s25  }
 0x2bf   :  { %584 = dma.done.wait [#allocation5], 512  }
 0x2c0   :  { %585 = vsyncadd [#allocation5], 4294966784 }
 0x2c1   :  { %421 = vsyncpa [#allocation4], 1 }
 0x2c2   :  { %422 = vsyncpa [#allocation7], 1 }
 0x2c3   :  { %423 = vsyncpa [#allocation5], 1 }

</bundles_post_ra>
